<compile_context>
chip_gen: v7x
topology: tpu7x:2x2x1
jax: 0.10.0
libtpu: 0.0.40
codegen_flags: <defaults>
</compile_context>

<pallas_src>
import math

import jax
import jax.numpy as jnp
from jax.experimental import pallas as pl
from jax.experimental.pallas import tpu as pltpu

# ---- model config (small, consistent with a Qwen2 decoder layer) ----
BATCH = 2
SEQ = 8
HIDDEN = 32
NUM_HEADS = 4
NUM_KV_HEADS = 2                         # grouped-query attention
HEAD_DIM = HIDDEN // NUM_HEADS           # 8
GROUP = NUM_HEADS // NUM_KV_HEADS        # 2
INTER = 64                               # MLP intermediate size
EPS = 1e-6                               # rms_norm_eps
THETA = 10000.0
DTYPE = jnp.float32

Q_DIM = NUM_HEADS * HEAD_DIM             # 32
KV_DIM = NUM_KV_HEADS * HEAD_DIM         # 16
PROJ_DIM = 2 * Q_DIM + 3 * KV_DIM        # q | k | v | q_rot | k_rot = 112
TOKENS = BATCH * SEQ                     # 16

# ---- packed parameter slab layout: ONE lane-dense [SLAB_ROWS, 128] f32 array ----
LANES = 128


def _align8(n):
    return -(-n // 8) * 8


ROW_IN_LN = 0                            # [1, HIDDEN]
ROW_POST_LN = ROW_IN_LN + 8              # [1, HIDDEN]
ROW_PROJ_B = ROW_POST_LN + 8             # [1, 128]   (cols 112:128 zero)
ROW_PROJ_W = ROW_PROJ_B + 8              # [HIDDEN, 128]
ROW_O_W = ROW_PROJ_W + _align8(HIDDEN)   # [Q_DIM, HIDDEN]
ROW_GU_W = ROW_O_W + _align8(Q_DIM)      # [HIDDEN, 2*INTER] = [32, 128]
ROW_DOWN_W = ROW_GU_W + _align8(HIDDEN)  # [INTER, HIDDEN]
ROW_ROPE = ROW_DOWN_W + _align8(INTER)   # [TOKENS, 2*Q_DIM]: cos | sin, pre-tiled
SLAB_ROWS = ROW_ROPE + _align8(TOKENS)   # 200


def _rmsnorm(x, w):
    var = jnp.mean(x * x, axis=-1, keepdims=True)
    return x * jax.lax.rsqrt(var + EPS) * w


def qwen2_decoder_layer_kernel(hs_ref, par_ref, out_ref, attn_sc):
    x = hs_ref[...].astype(jnp.float32)                        # [TOKENS, HIDDEN]

    # Static, 8-row-aligned views into the single packed parameter slab.
    in_ln = par_ref[ROW_IN_LN:ROW_IN_LN + 1, :HIDDEN]
    post_ln = par_ref[ROW_POST_LN:ROW_POST_LN + 1, :HIDDEN]
    proj_b = par_ref[ROW_PROJ_B:ROW_PROJ_B + 1, :]
    proj_w = par_ref[ROW_PROJ_W:ROW_PROJ_W + HIDDEN, :]
    o_w = par_ref[ROW_O_W:ROW_O_W + Q_DIM, :HIDDEN]
    gu_w = par_ref[ROW_GU_W:ROW_GU_W + HIDDEN, :]
    down_w = par_ref[ROW_DOWN_W:ROW_DOWN_W + INTER, :HIDDEN]
    rope = par_ref[ROW_ROPE:ROW_ROPE + TOKENS, :]
    cos_q, sin_q = rope[:, :Q_DIM], rope[:, Q_DIM:2 * Q_DIM]    # pre-tiled [TOKENS, Q_DIM]

    # ---------- self-attention block ----------
    h = _rmsnorm(x, in_ln)
    # Fused q|k|v|rotate_half(q)|rotate_half(k) projection (lane-dense 128-wide
    # weight; attention 1/sqrt(HEAD_DIM) already folded into the q columns).
    proj = jnp.dot(h, proj_w, preferred_element_type=jnp.float32) + proj_b
    c0, c1, c2, c3 = Q_DIM, Q_DIM + KV_DIM, Q_DIM + 2 * KV_DIM, 2 * Q_DIM + 2 * KV_DIM
    q, k, v = proj[:, :c0], proj[:, c0:c1], proj[:, c1:c2]
    q_rot, k_rot = proj[:, c2:c3], proj[:, c3:PROJ_DIM]

    # RoPE on the full slabs; cos_k/sin_k are just the leading KV_DIM lanes of cos_q/sin_q.
    q = q * cos_q + q_rot * sin_q                               # [TOKENS, Q_DIM]
    k = k * cos_q[:, :KV_DIM] + k_rot * sin_q[:, :KV_DIM]       # [TOKENS, KV_DIM]

    # Gather heads into a (batch*kv_head)-batched layout using only 8-aligned
    # sublane/lane slices + leading-axis stacks (layout-safe, no minor-dim reshapes).
    qg = jnp.stack(
        [jnp.concatenate(
            [q[b * SEQ:(b + 1) * SEQ,
               (g * GROUP + j) * HEAD_DIM:(g * GROUP + j + 1) * HEAD_DIM]
             for j in range(GROUP)], axis=0)                    # [GROUP*SEQ, HEAD_DIM]
         for b in range(BATCH) for g in range(NUM_KV_HEADS)], axis=0)
    kh = jnp.stack(
        [k[b * SEQ:(b + 1) * SEQ, g * HEAD_DIM:(g + 1) * HEAD_DIM]
         for b in range(BATCH) for g in range(NUM_KV_HEADS)], axis=0)
    vh = jnp.stack(
        [v[b * SEQ:(b + 1) * SEQ, g * HEAD_DIM:(g + 1) * HEAD_DIM]
         for b in range(BATCH) for g in range(NUM_KV_HEADS)], axis=0)

    # Causal additive mask generated in-kernel (no [B,S,S] DMA stream).
    # TODO(synk): padding / non-causal masks would need the mask input stream back.
    rq = jax.lax.broadcasted_iota(jnp.int32, (SEQ, SEQ), 0)
    rk = jax.lax.broadcasted_iota(jnp.int32, (SEQ, SEQ), 1)
    causal = jnp.where(rk <= rq, 0.0, -1e9).astype(jnp.float32)
    mask = jnp.concatenate([causal] * GROUP, axis=0)            # [GROUP*SEQ, SEQ]

    # One batched QK^T, one batched softmax, one batched PV (f32 throughout).
    s = jnp.einsum('bqd,bkd->bqk', qg, kh,
                   preferred_element_type=jnp.float32) + mask   # [B*NKV, GROUP*S, S]
    s = s - jnp.max(s, axis=-1, keepdims=True)
    p = jnp.exp(s)
    p = p * pl.reciprocal(jnp.sum(p, axis=-1, keepdims=True), approx=True)
    ov = jnp.einsum('bqk,bkd->bqd', p, vh,
                    preferred_element_type=jnp.float32)         # [B*NKV, GROUP*S, D]

    # Scatter per-head outputs into a token-major VMEM scratch at static offsets
    # (no lane-axis concatenates), then one o_proj matmul over all heads.
    for b in range(BATCH):
        for g in range(NUM_KV_HEADS):
            og = ov[b * NUM_KV_HEADS + g]                       # [GROUP*SEQ, HEAD_DIM]
            for j in range(GROUP):
                hd = g * GROUP + j
                attn_sc[b * SEQ:(b + 1) * SEQ,
                        hd * HEAD_DIM:(hd + 1) * HEAD_DIM] = og[j * SEQ:(j + 1) * SEQ, :]
    x = x + jnp.dot(attn_sc[...], o_w, preferred_element_type=jnp.float32)

    # ---------- MLP (SwiGLU), gate|up fused to a 128-lane-dense intermediate ------
    h2 = _rmsnorm(x, post_ln)
    gu = jnp.dot(h2, gu_w, preferred_element_type=jnp.float32)  # [TOKENS, 2*INTER]
    gate, up = gu[:, :INTER], gu[:, INTER:]
    mlp = jnp.dot((gate * jax.nn.sigmoid(gate)) * up, down_w,
                  preferred_element_type=jnp.float32)

    out_ref[...] = (x + mlp).astype(out_ref.dtype)


def rotary_embedding(max_seq_len, dim, offset=0):
    """Mirrors RotaryEmbedding.forward: inv_freq, outer product, cat(freqs, freqs).

    Returns cos/sin of shape [max_seq_len, dim]; the torch module's einops
    rearrange 'n d -> 1 n d' is dropped since the kernel consumes 2-D tables.
    """
    inv_freq = 1.0 / (THETA ** (jnp.arange(0, dim, 2, dtype=jnp.float32) / dim))
    seq = jnp.arange(max_seq_len, dtype=jnp.float32) + offset
    freqs = jnp.einsum("i,j->ij", seq, inv_freq)
    emb = jnp.concatenate([freqs, freqs], axis=-1)               # [S, dim]
    return jnp.cos(emb), jnp.sin(emb)


def _rotate_half_cols(w):
    """Apply rotate_half to the *output* columns of a [..., n_heads*HEAD_DIM] weight/bias.

    rotate_half(x @ W + b) == x @ rot(W) + rot(b), so RoPE's lane shuffle is absorbed
    into the projection weights at parameter-prep time.
    """
    lead = w.shape[:-1]
    n = w.shape[-1]
    wr = w.reshape(*lead, n // HEAD_DIM, 2, HEAD_DIM // 2)
    w1 = wr[..., 0, :]
    w2 = wr[..., 1, :]
    return jnp.stack([-w2, w1], axis=-2).reshape(*lead, n)


def pack_params(params):
    """One-time host-side packing of every weight/bias/LN/rope operand into a single
    lane-dense [SLAB_ROWS, 128] f32 slab (one DMA stream; static in-kernel views)."""
    (in_ln, q_w, q_b, k_w, k_b, v_w, v_b, o_w, post_ln, gate_w, up_w, down_w) = params
    scale = 1.0 / math.sqrt(HEAD_DIM)
    q_w = q_w * scale                    # fold attention scale into Q projection
    q_b = q_b * scale
    proj_w = jnp.concatenate(
        [q_w, k_w, v_w, _rotate_half_cols(q_w), _rotate_half_cols(k_w)], axis=1)  # [H, 112]
    proj_b = jnp.concatenate(
        [q_b, k_b, v_b, _rotate_half_cols(q_b), _rotate_half_cols(k_b)], axis=1)  # [1, 112]
    gu_w = jnp.concatenate([gate_w, up_w], axis=1)                                 # [H, 128]

    # TODO(synk): position_ids are ignored (offset=0, arange(SEQ)); left-padded or
    # KV-cache-offset sequences would need cos/sin gathered by position_ids.
    cos, sin = rotary_embedding(SEQ, HEAD_DIM)
    rope = jnp.concatenate([jnp.tile(cos, (BATCH, NUM_HEADS)),
                            jnp.tile(sin, (BATCH, NUM_HEADS))], axis=1)  # [TOKENS, 64]

    slab = jnp.zeros((SLAB_ROWS, LANES), jnp.float32)

    def put(s, row, block):
        return jax.lax.dynamic_update_slice(s, block.astype(jnp.float32), (row, 0))

    slab = put(slab, ROW_IN_LN, in_ln)
    slab = put(slab, ROW_POST_LN, post_ln)
    slab = put(slab, ROW_PROJ_B, proj_b)
    slab = put(slab, ROW_PROJ_W, proj_w)
    slab = put(slab, ROW_O_W, o_w)
    slab = put(slab, ROW_GU_W, gu_w)
    slab = put(slab, ROW_DOWN_W, down_w)
    slab = put(slab, ROW_ROPE, rope)
    return slab


def transformer_pipe_layer(inputs, param_slab):
    """Forward of TransformerPipeLayer (inference path; no grad checkpointing).

    The whole (batch, seq) is processed in a single grid step on every chip
    generation: at B=2/S=8/H=32 the kernel is fixed-overhead bound, so sharding the
    batch across v7x's two TensorCores would only duplicate the weight-slab DMA and
    expose the pipeline prologue.
    """
    hidden_states, attention_mask, position_ids, labels = inputs
    B, S, H = hidden_states.shape
    assert (B, S, H) == (BATCH, SEQ, HIDDEN)

    hs2 = hidden_states.reshape(B * S, H)      # token-major rows; free XLA reshape

    out2 = pl.pallas_call(
        qwen2_decoder_layer_kernel,
        out_shape=jax.ShapeDtypeStruct((B * S, H), hidden_states.dtype),
        grid=(1,),
        in_specs=[
            pl.BlockSpec((B * S, H), lambda i: (0, 0)),          # hidden_states
            pl.BlockSpec((SLAB_ROWS, LANES), lambda i: (0, 0)),  # packed params + rope
        ],
        out_specs=pl.BlockSpec((B * S, H), lambda i: (0, 0)),
        scratch_shapes=[pltpu.VMEM((B * S, Q_DIM), jnp.float32)],
        input_output_aliases={0: 0},           # residual layer: reuse hidden buffer
        compiler_params=pltpu.CompilerParams(dimension_semantics=("arbitrary",)),
    )(hs2, param_slab)

    out = out2.reshape(B, S, H)
    # pipe layer passes mask / position_ids / labels through unchanged
    return (out, attention_mask, position_ids, labels)


def init_params(key):
    ks = jax.random.split(key, 9)

    def w(k, shape, scale=0.05):
        return (scale * jax.random.normal(k, shape, dtype=jnp.float32)).astype(DTYPE)

    in_ln = jnp.ones((1, HIDDEN), DTYPE)
    q_w = w(ks[0], (HIDDEN, NUM_HEADS * HEAD_DIM))
    q_b = w(ks[1], (1, NUM_HEADS * HEAD_DIM))
    k_w = w(ks[2], (HIDDEN, NUM_KV_HEADS * HEAD_DIM))
    k_b = w(ks[3], (1, NUM_KV_HEADS * HEAD_DIM))
    v_w = w(ks[4], (HIDDEN, NUM_KV_HEADS * HEAD_DIM))
    v_b = w(ks[5], (1, NUM_KV_HEADS * HEAD_DIM))
    o_w = w(ks[6], (NUM_HEADS * HEAD_DIM, HIDDEN))
    post_ln = jnp.ones((1, HIDDEN), DTYPE)
    gate_w = w(ks[7], (HIDDEN, INTER))
    up_w = w(ks[8], (HIDDEN, INTER))
    down_w = w(jax.random.fold_in(key, 99), (INTER, HIDDEN))
    return (in_ln, q_w, q_b, k_w, k_b, v_w, v_b, o_w, post_ln, gate_w, up_w, down_w)


if __name__ == "__main__":
    key = jax.random.PRNGKey(0)
    k_hs, k_lbl, k_par = jax.random.split(key, 3)

    hidden_states = jax.random.normal(k_hs, (BATCH, SEQ, HIDDEN), dtype=DTYPE)

    # Additive causal mask [B, S, S] (pass-through only; the kernel regenerates the
    # causal mask in-kernel from iota, so no [B,S,S] DMA stream is needed).
    causal = jnp.tril(jnp.ones((SEQ, SEQ), dtype=bool))
    attention_mask = jnp.where(causal, 0.0, -1e9).astype(DTYPE)
    attention_mask = jnp.broadcast_to(attention_mask, (BATCH, SEQ, SEQ))

    position_ids = jnp.broadcast_to(jnp.arange(SEQ, dtype=jnp.int32), (BATCH, SEQ))
    labels = jax.random.randint(k_lbl, (BATCH, SEQ), 0, 100, dtype=jnp.int32)

    params = init_params(k_par)
    param_slab = pack_params(params)     # one-time host-side packing / folding

    # TODO(synk): training path uses torch.utils.checkpoint + torch.distributed;
    # only the forward (inference) semantics are implemented here.
    outs = transformer_pipe_layer(
        (hidden_states, attention_mask, position_ids, labels), param_slab)
    outs = jax.block_until_ready(outs)

    new_hidden = outs[0]
    assert new_hidden.shape == (BATCH, SEQ, HIDDEN)
    assert bool(jnp.all(jnp.isfinite(new_hidden)))
    print("KERNEL_OK")
</pallas_src>

<mosaic_0001>
module attributes {stable_mosaic.version = 11 : i64} {
  func.func @qwen2_decoder_layer_kernel(%arg0: i32, %arg1: memref<16x32xf32, #tpu.memory_space<vmem>>, %arg2: memref<200x128xf32, #tpu.memory_space<vmem>>, %arg3: memref<16x32xf32, #tpu.memory_space<vmem>>, %arg4: memref<16x32xf32, #tpu.memory_space<vmem>>) attributes {dimension_semantics = [#tpu.dimension_semantics<arbitrary>], iteration_bounds = array<i64: 1>, scalar_prefetch = 0 : i64, scratch_operands = 1 : i64, tpu.core_type = #tpu.core_type<tc>, window_params = [{pipeline_mode = #tpu.pipeline_mode<synchronous>, transform_indices = @transform_0, window_bounds = array<i64: 16, 32>}, {pipeline_mode = #tpu.pipeline_mode<synchronous>, transform_indices = @transform_1, window_bounds = array<i64: 200, 128>}, {pipeline_mode = #tpu.pipeline_mode<synchronous>, transform_indices = @transform_2, window_bounds = array<i64: 16, 32>}]} {
    %c0 = arith.constant 0 : index
    %c0_0 = arith.constant 0 : index
    %0 = vector.load %arg1[%c0, %c0_0] : memref<16x32xf32, #tpu.memory_space<vmem>>, vector<16x32xf32>
    %c0_1 = arith.constant 0 : index
    %c0_2 = arith.constant 0 : index
    %1 = vector.load %arg2[%c0_1, %c0_2] : memref<200x128xf32, #tpu.memory_space<vmem>>, vector<1x32xf32>
    %c8 = arith.constant 8 : index
    %c0_3 = arith.constant 0 : index
    %2 = vector.load %arg2[%c8, %c0_3] : memref<200x128xf32, #tpu.memory_space<vmem>>, vector<1x32xf32>
    %c16 = arith.constant 16 : index
    %c0_4 = arith.constant 0 : index
    %3 = vector.load %arg2[%c16, %c0_4] : memref<200x128xf32, #tpu.memory_space<vmem>>, vector<1x128xf32>
    %c24 = arith.constant 24 : index
    %c0_5 = arith.constant 0 : index
    %4 = vector.load %arg2[%c24, %c0_5] : memref<200x128xf32, #tpu.memory_space<vmem>>, vector<32x128xf32>
    %c56 = arith.constant 56 : index
    %c0_6 = arith.constant 0 : index
    %5 = vector.load %arg2[%c56, %c0_6] : memref<200x128xf32, #tpu.memory_space<vmem>>, vector<32x32xf32>
    %c88 = arith.constant 88 : index
    %c0_7 = arith.constant 0 : index
    %6 = vector.load %arg2[%c88, %c0_7] : memref<200x128xf32, #tpu.memory_space<vmem>>, vector<32x128xf32>
    %c120 = arith.constant 120 : index
    %c0_8 = arith.constant 0 : index
    %7 = vector.load %arg2[%c120, %c0_8] : memref<200x128xf32, #tpu.memory_space<vmem>>, vector<64x32xf32>
    %c184 = arith.constant 184 : index
    %c0_9 = arith.constant 0 : index
    %8 = vector.load %arg2[%c184, %c0_9] : memref<200x128xf32, #tpu.memory_space<vmem>>, vector<16x128xf32>
    %9 = vector.extract_strided_slice %8 {offsets = [0, 0], sizes = [16, 32], strides = [1, 1]} : vector<16x128xf32> to vector<16x32xf32>
    %10 = vector.extract_strided_slice %8 {offsets = [0, 32], sizes = [16, 32], strides = [1, 1]} : vector<16x128xf32> to vector<16x32xf32>
    %11 = arith.mulf %0, %0 : vector<16x32xf32>
    %cst = arith.constant dense<0.000000e+00> : vector<16xf32>
    %12 = vector.multi_reduction <add>, %11, %cst [1] : vector<16x32xf32> to vector<16xf32>
    %13 = vector.shape_cast %12 : vector<16xf32> to vector<16x1xf32>
    %cst_10 = arith.constant 3.200000e+01 : f32
    %14 = vector.broadcast %cst_10 : f32 to vector<16x1xf32>
    %15 = arith.divf %13, %14 : vector<16x1xf32>
    %cst_11 = arith.constant 9.99999997E-7 : f32
    %16 = vector.broadcast %cst_11 : f32 to vector<16x1xf32>
    %17 = arith.addf %15, %16 : vector<16x1xf32>
    %18 = math.rsqrt %17 : vector<16x1xf32>
    %19 = vector.broadcast %18 : vector<16x1xf32> to vector<16x32xf32>
    %20 = arith.mulf %0, %19 : vector<16x32xf32>
    %21 = vector.broadcast %1 : vector<1x32xf32> to vector<16x32xf32>
    %22 = arith.mulf %20, %21 : vector<16x32xf32>
    %cst_12 = arith.constant dense<0.000000e+00> : vector<16x128xf32>
    %23 = tpu.matmul %22, %4, %cst_12 {dimension_numbers = #tpu.dot_dimension_numbers<[1], [0], [0], [1], [0, 0, 1, 1], [], []>} : vector<16x32xf32>, vector<32x128xf32>, vector<16x128xf32> -> vector<16x128xf32>
    %24 = vector.broadcast %3 : vector<1x128xf32> to vector<16x128xf32>
    %25 = arith.addf %23, %24 : vector<16x128xf32>
    %26 = vector.extract_strided_slice %25 {offsets = [0, 0], sizes = [16, 32], strides = [1, 1]} : vector<16x128xf32> to vector<16x32xf32>
    %27 = vector.extract_strided_slice %25 {offsets = [0, 32], sizes = [16, 16], strides = [1, 1]} : vector<16x128xf32> to vector<16x16xf32>
    %28 = vector.extract_strided_slice %25 {offsets = [0, 48], sizes = [16, 16], strides = [1, 1]} : vector<16x128xf32> to vector<16x16xf32>
    %29 = vector.extract_strided_slice %25 {offsets = [0, 64], sizes = [16, 32], strides = [1, 1]} : vector<16x128xf32> to vector<16x32xf32>
    %30 = vector.extract_strided_slice %25 {offsets = [0, 96], sizes = [16, 16], strides = [1, 1]} : vector<16x128xf32> to vector<16x16xf32>
    %31 = arith.mulf %26, %9 : vector<16x32xf32>
    %32 = arith.mulf %29, %10 : vector<16x32xf32>
    %33 = arith.addf %31, %32 : vector<16x32xf32>
    %34 = vector.extract_strided_slice %9 {offsets = [0, 0], sizes = [16, 16], strides = [1, 1]} : vector<16x32xf32> to vector<16x16xf32>
    %35 = arith.mulf %27, %34 : vector<16x16xf32>
    %36 = vector.extract_strided_slice %10 {offsets = [0, 0], sizes = [16, 16], strides = [1, 1]} : vector<16x32xf32> to vector<16x16xf32>
    %37 = arith.mulf %30, %36 : vector<16x16xf32>
    %38 = arith.addf %35, %37 : vector<16x16xf32>
    %39 = vector.extract_strided_slice %33 {offsets = [0, 0], sizes = [8, 8], strides = [1, 1]} : vector<16x32xf32> to vector<8x8xf32>
    %40 = vector.extract_strided_slice %33 {offsets = [0, 8], sizes = [8, 8], strides = [1, 1]} : vector<16x32xf32> to vector<8x8xf32>
    %41 = tpu.concatenate %39, %40 in 0 : vector<8x8xf32>, vector<8x8xf32> -> vector<16x8xf32>
    %42 = vector.extract_strided_slice %33 {offsets = [0, 16], sizes = [8, 8], strides = [1, 1]} : vector<16x32xf32> to vector<8x8xf32>
    %43 = vector.extract_strided_slice %33 {offsets = [0, 24], sizes = [8, 8], strides = [1, 1]} : vector<16x32xf32> to vector<8x8xf32>
    %44 = tpu.concatenate %42, %43 in 0 : vector<8x8xf32>, vector<8x8xf32> -> vector<16x8xf32>
    %45 = vector.extract_strided_slice %33 {offsets = [8, 0], sizes = [8, 8], strides = [1, 1]} : vector<16x32xf32> to vector<8x8xf32>
    %46 = vector.extract_strided_slice %33 {offsets = [8, 8], sizes = [8, 8], strides = [1, 1]} : vector<16x32xf32> to vector<8x8xf32>
    %47 = tpu.concatenate %45, %46 in 0 : vector<8x8xf32>, vector<8x8xf32> -> vector<16x8xf32>
    %48 = vector.extract_strided_slice %33 {offsets = [8, 16], sizes = [8, 8], strides = [1, 1]} : vector<16x32xf32> to vector<8x8xf32>
    %49 = vector.extract_strided_slice %33 {offsets = [8, 24], sizes = [8, 8], strides = [1, 1]} : vector<16x32xf32> to vector<8x8xf32>
    %50 = tpu.concatenate %48, %49 in 0 : vector<8x8xf32>, vector<8x8xf32> -> vector<16x8xf32>
    %51 = vector.shape_cast %41 : vector<16x8xf32> to vector<1x16x8xf32>
    %52 = vector.shape_cast %44 : vector<16x8xf32> to vector<1x16x8xf32>
    %53 = vector.shape_cast %47 : vector<16x8xf32> to vector<1x16x8xf32>
    %54 = vector.shape_cast %50 : vector<16x8xf32> to vector<1x16x8xf32>
    %55 = tpu.concatenate %51, %52, %53, %54 in 0 : vector<1x16x8xf32>, vector<1x16x8xf32>, vector<1x16x8xf32>, vector<1x16x8xf32> -> vector<4x16x8xf32>
    %56 = vector.extract_strided_slice %38 {offsets = [0, 0], sizes = [8, 8], strides = [1, 1]} : vector<16x16xf32> to vector<8x8xf32>
    %57 = vector.extract_strided_slice %38 {offsets = [0, 8], sizes = [8, 8], strides = [1, 1]} : vector<16x16xf32> to vector<8x8xf32>
    %58 = vector.extract_strided_slice %38 {offsets = [8, 0], sizes = [8, 8], strides = [1, 1]} : vector<16x16xf32> to vector<8x8xf32>
    %59 = vector.extract_strided_slice %38 {offsets = [8, 8], sizes = [8, 8], strides = [1, 1]} : vector<16x16xf32> to vector<8x8xf32>
    %60 = vector.shape_cast %56 : vector<8x8xf32> to vector<1x8x8xf32>
    %61 = vector.shape_cast %57 : vector<8x8xf32> to vector<1x8x8xf32>
    %62 = vector.shape_cast %58 : vector<8x8xf32> to vector<1x8x8xf32>
    %63 = vector.shape_cast %59 : vector<8x8xf32> to vector<1x8x8xf32>
    %64 = tpu.concatenate %60, %61, %62, %63 in 0 : vector<1x8x8xf32>, vector<1x8x8xf32>, vector<1x8x8xf32>, vector<1x8x8xf32> -> vector<4x8x8xf32>
    %65 = vector.extract_strided_slice %28 {offsets = [0, 0], sizes = [8, 8], strides = [1, 1]} : vector<16x16xf32> to vector<8x8xf32>
    %66 = vector.extract_strided_slice %28 {offsets = [0, 8], sizes = [8, 8], strides = [1, 1]} : vector<16x16xf32> to vector<8x8xf32>
    %67 = vector.extract_strided_slice %28 {offsets = [8, 0], sizes = [8, 8], strides = [1, 1]} : vector<16x16xf32> to vector<8x8xf32>
    %68 = vector.extract_strided_slice %28 {offsets = [8, 8], sizes = [8, 8], strides = [1, 1]} : vector<16x16xf32> to vector<8x8xf32>
    %69 = vector.shape_cast %65 : vector<8x8xf32> to vector<1x8x8xf32>
    %70 = vector.shape_cast %66 : vector<8x8xf32> to vector<1x8x8xf32>
    %71 = vector.shape_cast %67 : vector<8x8xf32> to vector<1x8x8xf32>
    %72 = vector.shape_cast %68 : vector<8x8xf32> to vector<1x8x8xf32>
    %73 = tpu.concatenate %69, %70, %71, %72 in 0 : vector<1x8x8xf32>, vector<1x8x8xf32>, vector<1x8x8xf32>, vector<1x8x8xf32> -> vector<4x8x8xf32>
    %74 = tpu.iota {dimensions = array<i32: 0>} : vector<8x8xi32>
    %75 = tpu.iota {dimensions = array<i32: 1>} : vector<8x8xi32>
    %76 = arith.cmpi sle, %75, %74 : vector<8x8xi32>
    %cst_13 = arith.constant 0.000000e+00 : f32
    %cst_14 = arith.constant -1.000000e+09 : f32
    %77 = vector.broadcast %cst_13 : f32 to vector<8x8xf32>
    %78 = vector.broadcast %cst_14 : f32 to vector<8x8xf32>
    %79 = arith.select %76, %77, %78 : vector<8x8xi1>, vector<8x8xf32>
    %80 = tpu.concatenate %79, %79 in 0 : vector<8x8xf32>, vector<8x8xf32> -> vector<16x8xf32>
    "tpu.trace_start"() <{level = 10 : i32, message = "bqd,bkd->bqk"}> : () -> ()
    %cst_15 = arith.constant dense<0.000000e+00> : vector<4x16x8xf32>
    %81 = tpu.matmul %55, %64, %cst_15 {dimension_numbers = #tpu.dot_dimension_numbers<[2], [2], [1], [1], [0, 0, 0, 1, 1, 1], [0], [0]>} : vector<4x16x8xf32>, vector<4x8x8xf32>, vector<4x16x8xf32> -> vector<4x16x8xf32>
    "tpu.trace_stop"() : () -> ()
    %82 = vector.shape_cast %80 : vector<16x8xf32> to vector<1x16x8xf32>
    %83 = vector.broadcast %82 : vector<1x16x8xf32> to vector<4x16x8xf32>
    %84 = arith.addf %81, %83 : vector<4x16x8xf32>
    %cst_16 = arith.constant dense<0xFF800000> : vector<4x16xf32>
    %85 = vector.multi_reduction <maximumf>, %84, %cst_16 [2] : vector<4x16x8xf32> to vector<4x16xf32>
    %86 = vector.shape_cast %85 : vector<4x16xf32> to vector<4x16x1xf32>
    %87 = vector.broadcast %86 : vector<4x16x1xf32> to vector<4x16x8xf32>
    %88 = arith.subf %84, %87 : vector<4x16x8xf32>
    %89 = math.exp %88 : vector<4x16x8xf32>
    %cst_17 = arith.constant dense<0.000000e+00> : vector<4x16xf32>
    %90 = vector.multi_reduction <add>, %89, %cst_17 [2] : vector<4x16x8xf32> to vector<4x16xf32>
    %91 = vector.shape_cast %90 : vector<4x16xf32> to vector<4x16x1xf32>
    %92 = tpu.reciprocal %91 {approx = true} : vector<4x16x1xf32> -> vector<4x16x1xf32>
    %93 = vector.broadcast %92 : vector<4x16x1xf32> to vector<4x16x8xf32>
    %94 = arith.mulf %89, %93 : vector<4x16x8xf32>
    "tpu.trace_start"() <{level = 10 : i32, message = "bqk,bkd->bqd"}> : () -> ()
    %cst_18 = arith.constant dense<0.000000e+00> : vector<4x16x8xf32>
    %95 = tpu.matmul %94, %73, %cst_18 {dimension_numbers = #tpu.dot_dimension_numbers<[2], [1], [1], [2], [0, 0, 0, 1, 1, 2], [0], [0]>} : vector<4x16x8xf32>, vector<4x8x8xf32>, vector<4x16x8xf32> -> vector<4x16x8xf32>
    "tpu.trace_stop"() : () -> ()
    %96 = vector.extract_strided_slice %95 {offsets = [0, 0, 0], sizes = [1, 16, 8], strides = [1, 1, 1]} : vector<4x16x8xf32> to vector<1x16x8xf32>
    %97 = vector.shape_cast %96 : vector<1x16x8xf32> to vector<16x8xf32>
    %98 = vector.extract_strided_slice %97 {offsets = [0, 0], sizes = [8, 8], strides = [1, 1]} : vector<16x8xf32> to vector<8x8xf32>
    %c0_19 = arith.constant 0 : index
    %c0_20 = arith.constant 0 : index
    %99 = vector.load %arg4[%c0_19, %c0_20] : memref<16x32xf32, #tpu.memory_space<vmem>>, vector<8x8xf32>
    tpu.vector_store %arg4[%c0_19, %c0_20], %98 {strides = array<i32>} : memref<16x32xf32, #tpu.memory_space<vmem>>, vector<8x8xf32>,
    %100 = vector.extract_strided_slice %97 {offsets = [8, 0], sizes = [8, 8], strides = [1, 1]} : vector<16x8xf32> to vector<8x8xf32>
    %c0_21 = arith.constant 0 : index
    %c8_22 = arith.constant 8 : index
    %101 = vector.load %arg4[%c0_21, %c8_22] : memref<16x32xf32, #tpu.memory_space<vmem>>, vector<8x8xf32>
    tpu.vector_store %arg4[%c0_21, %c8_22], %100 {strides = array<i32>} : memref<16x32xf32, #tpu.memory_space<vmem>>, vector<8x8xf32>,
    %102 = vector.extract_strided_slice %95 {offsets = [1, 0, 0], sizes = [1, 16, 8], strides = [1, 1, 1]} : vector<4x16x8xf32> to vector<1x16x8xf32>
    %103 = vector.shape_cast %102 : vector<1x16x8xf32> to vector<16x8xf32>
    %104 = vector.extract_strided_slice %103 {offsets = [0, 0], sizes = [8, 8], strides = [1, 1]} : vector<16x8xf32> to vector<8x8xf32>
    %c0_23 = arith.constant 0 : index
    %c16_24 = arith.constant 16 : index
    %105 = vector.load %arg4[%c0_23, %c16_24] : memref<16x32xf32, #tpu.memory_space<vmem>>, vector<8x8xf32>
    tpu.vector_store %arg4[%c0_23, %c16_24], %104 {strides = array<i32>} : memref<16x32xf32, #tpu.memory_space<vmem>>, vector<8x8xf32>,
    %106 = vector.extract_strided_slice %103 {offsets = [8, 0], sizes = [8, 8], strides = [1, 1]} : vector<16x8xf32> to vector<8x8xf32>
    %c0_25 = arith.constant 0 : index
    %c24_26 = arith.constant 24 : index
    %107 = vector.load %arg4[%c0_25, %c24_26] : memref<16x32xf32, #tpu.memory_space<vmem>>, vector<8x8xf32>
    tpu.vector_store %arg4[%c0_25, %c24_26], %106 {strides = array<i32>} : memref<16x32xf32, #tpu.memory_space<vmem>>, vector<8x8xf32>,
    %108 = vector.extract_strided_slice %95 {offsets = [2, 0, 0], sizes = [1, 16, 8], strides = [1, 1, 1]} : vector<4x16x8xf32> to vector<1x16x8xf32>
    %109 = vector.shape_cast %108 : vector<1x16x8xf32> to vector<16x8xf32>
    %110 = vector.extract_strided_slice %109 {offsets = [0, 0], sizes = [8, 8], strides = [1, 1]} : vector<16x8xf32> to vector<8x8xf32>
    %c8_27 = arith.constant 8 : index
    %c0_28 = arith.constant 0 : index
    %111 = vector.load %arg4[%c8_27, %c0_28] : memref<16x32xf32, #tpu.memory_space<vmem>>, vector<8x8xf32>
    tpu.vector_store %arg4[%c8_27, %c0_28], %110 {strides = array<i32>} : memref<16x32xf32, #tpu.memory_space<vmem>>, vector<8x8xf32>,
    %112 = vector.extract_strided_slice %109 {offsets = [8, 0], sizes = [8, 8], strides = [1, 1]} : vector<16x8xf32> to vector<8x8xf32>
    %c8_29 = arith.constant 8 : index
    %c8_30 = arith.constant 8 : index
    %113 = vector.load %arg4[%c8_29, %c8_30] : memref<16x32xf32, #tpu.memory_space<vmem>>, vector<8x8xf32>
    tpu.vector_store %arg4[%c8_29, %c8_30], %112 {strides = array<i32>} : memref<16x32xf32, #tpu.memory_space<vmem>>, vector<8x8xf32>,
    %114 = vector.extract_strided_slice %95 {offsets = [3, 0, 0], sizes = [1, 16, 8], strides = [1, 1, 1]} : vector<4x16x8xf32> to vector<1x16x8xf32>
    %115 = vector.shape_cast %114 : vector<1x16x8xf32> to vector<16x8xf32>
    %116 = vector.extract_strided_slice %115 {offsets = [0, 0], sizes = [8, 8], strides = [1, 1]} : vector<16x8xf32> to vector<8x8xf32>
    %c8_31 = arith.constant 8 : index
    %c16_32 = arith.constant 16 : index
    %117 = vector.load %arg4[%c8_31, %c16_32] : memref<16x32xf32, #tpu.memory_space<vmem>>, vector<8x8xf32>
    tpu.vector_store %arg4[%c8_31, %c16_32], %116 {strides = array<i32>} : memref<16x32xf32, #tpu.memory_space<vmem>>, vector<8x8xf32>,
    %118 = vector.extract_strided_slice %115 {offsets = [8, 0], sizes = [8, 8], strides = [1, 1]} : vector<16x8xf32> to vector<8x8xf32>
    %c8_33 = arith.constant 8 : index
    %c24_34 = arith.constant 24 : index
    %119 = vector.load %arg4[%c8_33, %c24_34] : memref<16x32xf32, #tpu.memory_space<vmem>>, vector<8x8xf32>
    tpu.vector_store %arg4[%c8_33, %c24_34], %118 {strides = array<i32>} : memref<16x32xf32, #tpu.memory_space<vmem>>, vector<8x8xf32>,
    %c0_35 = arith.constant 0 : index
    %c0_36 = arith.constant 0 : index
    %120 = vector.load %arg4[%c0_35, %c0_36] : memref<16x32xf32, #tpu.memory_space<vmem>>, vector<16x32xf32>
    %cst_37 = arith.constant dense<0.000000e+00> : vector<16x32xf32>
    %121 = tpu.matmul %120, %5, %cst_37 {dimension_numbers = #tpu.dot_dimension_numbers<[1], [0], [0], [1], [0, 0, 1, 1], [], []>} : vector<16x32xf32>, vector<32x32xf32>, vector<16x32xf32> -> vector<16x32xf32>
    %122 = arith.addf %0, %121 : vector<16x32xf32>
    %123 = arith.mulf %122, %122 : vector<16x32xf32>
    %cst_38 = arith.constant dense<0.000000e+00> : vector<16xf32>
    %124 = vector.multi_reduction <add>, %123, %cst_38 [1] : vector<16x32xf32> to vector<16xf32>
    %125 = vector.shape_cast %124 : vector<16xf32> to vector<16x1xf32>
    %cst_39 = arith.constant 3.200000e+01 : f32
    %126 = vector.broadcast %cst_39 : f32 to vector<16x1xf32>
    %127 = arith.divf %125, %126 : vector<16x1xf32>
    %cst_40 = arith.constant 9.99999997E-7 : f32
    %128 = vector.broadcast %cst_40 : f32 to vector<16x1xf32>
    %129 = arith.addf %127, %128 : vector<16x1xf32>
    %130 = math.rsqrt %129 : vector<16x1xf32>
    %131 = vector.broadcast %130 : vector<16x1xf32> to vector<16x32xf32>
    %132 = arith.mulf %122, %131 : vector<16x32xf32>
    %133 = vector.broadcast %2 : vector<1x32xf32> to vector<16x32xf32>
    %134 = arith.mulf %132, %133 : vector<16x32xf32>
    %cst_41 = arith.constant dense<0.000000e+00> : vector<16x128xf32>
    %135 = tpu.matmul %134, %6, %cst_41 {dimension_numbers = #tpu.dot_dimension_numbers<[1], [0], [0], [1], [0, 0, 1, 1], [], []>} : vector<16x32xf32>, vector<32x128xf32>, vector<16x128xf32> -> vector<16x128xf32>
    %136 = vector.extract_strided_slice %135 {offsets = [0, 0], sizes = [16, 64], strides = [1, 1]} : vector<16x128xf32> to vector<16x64xf32>
    %137 = vector.extract_strided_slice %135 {offsets = [0, 64], sizes = [16, 64], strides = [1, 1]} : vector<16x128xf32> to vector<16x64xf32>
    %138 = arith.negf %136 : vector<16x64xf32>
    %139 = math.exp %138 : vector<16x64xf32>
    %cst_42 = arith.constant 1.000000e+00 : f32
    %140 = vector.broadcast %cst_42 : f32 to vector<16x64xf32>
    %141 = arith.addf %140, %139 : vector<16x64xf32>
    %142 = arith.divf %140, %141 : vector<16x64xf32>
    %143 = arith.mulf %136, %142 : vector<16x64xf32>
    %144 = arith.mulf %143, %137 : vector<16x64xf32>
    %cst_43 = arith.constant dense<0.000000e+00> : vector<16x32xf32>
    %145 = tpu.matmul %144, %7, %cst_43 {dimension_numbers = #tpu.dot_dimension_numbers<[1], [0], [0], [1], [0, 0, 1, 1], [], []>} : vector<16x64xf32>, vector<64x32xf32>, vector<16x32xf32> -> vector<16x32xf32>
    %146 = arith.addf %122, %145 : vector<16x32xf32>
    %c0_44 = arith.constant 0 : index
    %c0_45 = arith.constant 0 : index
    %147 = vector.load %arg3[%c0_44, %c0_45] : memref<16x32xf32, #tpu.memory_space<vmem>>, vector<16x32xf32>
    tpu.vector_store %arg3[%c0_44, %c0_45], %146 {strides = array<i32>} : memref<16x32xf32, #tpu.memory_space<vmem>>, vector<16x32xf32>,
    return
  }
  func.func @transform_0(%arg0: i32) -> (i32, i32) {
    %c0_i32 = arith.constant 0 : i32
    %c0_i32_0 = arith.constant 0 : i32
    %c0_i32_1 = arith.constant 0 : i32
    return %c0_i32, %c0_i32_0 : i32, i32
  }
  func.func @transform_1(%arg0: i32) -> (i32, i32) {
    %c0_i32 = arith.constant 0 : i32
    %c0_i32_0 = arith.constant 0 : i32
    %c0_i32_1 = arith.constant 0 : i32
    return %c0_i32, %c0_i32_0 : i32, i32
  }
  func.func @transform_2(%arg0: i32) -> (i32, i32) {
    %c0_i32 = arith.constant 0 : i32
    %c0_i32_0 = arith.constant 0 : i32
    %c0_i32_1 = arith.constant 0 : i32
    return %c0_i32, %c0_i32_0 : i32, i32
  }
}

</mosaic_0001>

<bundles_post_ra>
// kernel: tpu_custom_call.1
= control target key start
LH: loop header
LB: loop body
LE: loop exit
PB: predicated region body
PF: predicated region fallthrough
CT: control target
= control target key end

     0   :  { %7 = vsyncpa [#allocation4], 0  ;;  %s1913_s0 = inlined_call_operand.hbm [shape: f32[16,32], index: 0, kind: input, shape index: {}, may-alias: {0,2}]   ;;  %s1914_s1 = inlined_call_operand.hbm [shape: f32[200,128], index: 1, kind: input, shape index: {}]   ;;  %s1915_s2 = inlined_call_operand.hbm [shape: f32[16,32], index: 2, kind: output, shape index: {}, may-alias: {0,2}]  }
   0x1   :  { %8 = vsyncpa [#allocation7], 0 }
   0x2   :  { %9 = vsyncpa [#allocation5], 0  ;;  %s1707_s9 = smov [#allocation3]   ;;  %s1635_s13 = scalar_lea.hbm %s1913_s0, 256 }
   0x3   :  { %s15_s10 = sshll.u32 %s1707_s9, 4  ;;  %p1636_p0 = scmp.ne.s32.totalorder %s1913_s0, %s1635_s13  ;;  %s16_s10 = int_to_ptr.vmem [resolvable:$true] %s15_s10 }
   0x4   :  { %p1639_p1 = scmp.lt.u32.totalorder %s1635_s13, %s1913_s0 }
   0x6   :  { %p1641_p2 = pnand %p1639_p1, %p1636_p0 }
   0x8   :  { %1644 = shalt.err (!%p1641_p2)
}
   0x9   :  { %s1645_s18 = scalar_lea.vmem %s16_s10, 256  ;;  %p1650_p4 = scmp.lt.s32.totalorder %s16_s10, %s16_s10 }
   0xa   :  { %p1646_p3 = scmp.ne.s32.totalorder %s16_s10, %s1645_s18  ;;  %p1651_p5 = scmp.lt.s32.totalorder %s1645_s18, %s1645_s18 }
   0xc   :  { %p1652_p6 = por %p1651_p5, %p1650_p4 }
   0xe   :  { %p1653_p7 = pnand %p1652_p6, %p1646_p3 }
  0x10   :  { %1656 = shalt.err (!%p1653_p7)
}
  0x11   :  { %s1708_s19 = smov 128   ;;  %s1709_s20 = smov 8  }
  0x12   :  { %21 = dma.hbm_to_vmem [thread:$0]  %s1913_s0, 256, %s16_s10, [#allocation4], %s1708_s19, %s1708_s19, %s1709_s20  }
  0x13   :  { %s1710_s23 = smov [#allocation6]   ;;  %s1657_s27 = scalar_lea.hbm %s1914_s1, 3200 }
  0x14   :  { %s27_s24 = sshll.u32 %s1710_s23, 4  ;;  %p1658_p8 = scmp.ne.s32.totalorder %s1914_s1, %s1657_s27  ;;  %s28_s24 = int_to_ptr.vmem [resolvable:$true] %s27_s24 }
  0x15   :  { %p1661_p9 = scmp.lt.u32.totalorder %s1657_s27, %s1914_s1 }
  0x17   :  { %p1663_p10 = pnand %p1661_p9, %p1658_p8 }
  0x19   :  { %1666 = shalt.err (!%p1663_p10)
}
  0x1a   :  { %s1667_s4 = scalar_lea.vmem %s28_s24, 3200  ;;  %p1672_p12 = scmp.lt.s32.totalorder %s28_s24, %s28_s24 }
  0x1b   :  { %p1668_p11 = scmp.ne.s32.totalorder %s28_s24, %s1667_s4  ;;  %p1673_p13 = scmp.lt.s32.totalorder %s1667_s4, %s1667_s4 }
  0x1d   :  { %p1674_p0 = por %p1673_p13, %p1672_p12 }
  0x1f   :  { %p1675_p1 = pnand %p1674_p0, %p1668_p11 }
  0x21   :  { %1678 = shalt.err (!%p1675_p1)
}
  0x22   :  { %33 = dma.hbm_to_vmem [thread:$0]  %s1914_s1, 3200, %s28_s24, [#allocation7], %s1708_s19, %s1708_s19, %s1709_s20  }
  0x23   :  { %1701 = dma.done.wait [#allocation4], 256  }
  0x24   :  { %1702 = vsyncadd [#allocation4], 4294967040 }
  0x25   :  { %1703 = dma.done.wait [#allocation7], 3200  }
  0x26   :  { %1704 = vsyncadd [#allocation7], 4294964096  ;;  %v1766_v0 = vld [vmem:[#allocation3] sm:$0xff]  ;;  %vm69_vm0 = vcmask 261120   ;;  %v1768_v1 = vld [vmem:[#allocation3 + $0x8] sm:$0xff]  ;;  %s1711_s1 = smov 64   ;;  %v242_v62 = vlaneseq }
  0x27   :  { %v67_v2 = vmul.f32 %v1766_v0, %v1766_v0  ;;  %v68_v3 = vmul.f32 %v1768_v1, %v1768_v1  ;;  %v45_v6 = vld [vmem:[#allocation6 + $0x18] sm:$0xff]  ;;  %v46_v7 = vld [vmem:[#allocation6 + $0x20] sm:$0xff]  ;;  %v47_v8 = vld [vmem:[#allocation6 + $0x28] sm:$0xff]  ;;  %s1712_s6 = smov 32   ;;  %s1713_s7 = smov 120   ;;  %vm250_vm1 = vcmask 64512  }
  0x28   :  { %v1533_v9 = vpack.c.bf16 %v46_v7, %v45_v6  ;;  %v48_v10 = vld [vmem:[#allocation6 + $0x30] sm:$0xff]  ;;  %v65_v12 = vld [vmem:[#allocation6 + $0xb8] sm:$0xff]  ;;  %v66_v13 = vld [vmem:[#allocation6 + $0xc0] sm:$0xff]  ;;  %s1714_s8 = smov 96   ;;  %s1715_s9 = smov 112   ;;  %v243_v63 = vshrl.u32 %v242_v62, 7 }
  0x29   :  { %v70_v4 = vsel %vm69_vm0, %v67_v2, 0.0  ;;  %v73_v5 = vsel %vm69_vm0, %v68_v3, 0.0  ;;  %v1537_v11 = vpack.c.bf16 %v48_v10, %v47_v8  ;;  %198 = vrot.lane.b32.xlu1 %v65_v12, %s1711_s1  ;;  %v1356_v21 = vld [vmem:[#allocation6] ss:$0 sm:$0xff]  ;;  %v1357_v27 = vld [vmem:[#allocation6 + $0x10] ss:$0 sm:$0xff] }
  0x2a   :  { %71 = vadd.xlane.f32.xlu0 %v70_v4  ;;  %1534 = vmatprep.subr.bf16.mxu1 %v1533_v9  ;;  %v245_v2 = vand.u32 127, %v242_v62  ;;  %v1716_v3 = vmov -1e+09   ;;  %s1717_s10 = smov 80   ;;  %s1718_s11 = smov 24   ;;  %vm1010_vm3 = vcmask 130112  }
  0x2b   :  { %1536 = vmatpush3.bf16.msra.mxu1 %v1533_v9  ;;  %s1719_s12 = smov 16   ;;  %vm1016_vm4 = vcmask 195712   ;;  %vm1022_vm5 = vcmask 261312   ;;  %vm1252_vm6 = vcmask 523264   ;;  %s1720_s13 = smov [#allocation8]  }
  0x2c   :  { %1538 = vmatprep.subr.bf16.mxu1 %v1537_v11  ;;  %vm246_vm2 = vcmp.le.s32.totalorder %v245_v2, %v243_v63  ;;  %s1343_s14 = sshll.u32 %s1720_s13, 4  ;;  %s1344_s14 = int_to_ptr.vmem [resolvable:$true] %s1343_s14 }
  0x2d   :  { %180 = vrot.lane.b32.xlu1 %v65_v12, %s1712_s6  ;;  %v247_v4 = vsel %vm246_vm2, 0.0, %v1716_v3  ;;  %s1679_s15 = scalar_lea.vmem %s1344_s14, 256  ;;  %p1684_p3 = scmp.lt.s32.totalorder %s1344_s14, %s1344_s14 }
  0x2e   :  { %74 = vadd.xlane.f32.xlu0 %v73_v5  ;;  %p1680_p2 = scmp.ne.s32.totalorder %s1344_s14, %s1679_s15  ;;  %p1685_p4 = scmp.lt.s32.totalorder %s1679_s15, %s1679_s15 }
  0x2f   :  { %1540 = vmatpush3.bf16.msra.mxu1 %v1537_v11 }
  0x30   :  { %p1686_p5 = por %p1685_p4, %p1684_p3 }
  0x31   :  { %182 = vrot.lane.b32.xlu1 %v66_v13, %s1712_s6 }
  0x32   :  { %p1687_p6 = pnand %p1686_p5, %p1680_p2 }
  0x44   :  { %200 = vrot.lane.b32.xlu0 %v66_v13, %s1711_s1 }
  0x9b   :  { %v199_v28 = vpop.permute.xlu1 %198 }
  0x9f   :  { %v181_v35 = vpop.permute.xlu1 %180 }
  0xa3   :  { %v183_v38 = vpop.permute.xlu1 %182 }
  0xb7   :  { %v72_v14 = vpop.xlane.xlu0 %71 }
  0xb8   :  { %v77_v15 = vmul.f32 0.03125, %v72_v14 }
  0xba   :  { %v79_v16 = vadd.f32 1e-06, %v77_v15 }
  0xbb   :  { %v75_v17 = vpop.xlane.xlu0 %74 }
  0xbc   :  { %1587 = vrsqrt.f32 %v79_v16  ;;  %v78_v18 = vmul.f32 0.03125, %v75_v17 }
  0xbe   :  { %v80_v19 = vadd.f32 1e-06, %v78_v18 }
  0xbf   :  { %v201_v30 = vpop.permute.xlu0 %200 }
  0xc0   :  { %1589 = vrsqrt.f32 %v80_v19 }
  0xc6   :  { %v1588_v20 = vpop.eup %1587 }
  0xc7   :  { %v83_v22 = vmul.f32 %v1588_v20, %v1766_v0 }
  0xc9   :  { %v89_v23 = vmul.f32 %v1356_v21, %v83_v22 }
  0xca   :  { %v1590_v24 = vpop.eup %1589 }
  0xcb   :  { %v84_v25 = vmul.f32 %v1590_v24, %v1768_v1  ;;  %1449 = vmatprep.mubr.msk.f32.mxu1 %vm69_vm0, %v89_v23 }
  0xcd   :  { %v90_v26 = vmul.f32 %v1356_v21, %v84_v25 }
  0xcf   :  { %1450 = vmatmul.mubr.msk.f32.vlgmr.msra.gmra.mrb[0].mxu1 %vm69_vm0, %v90_v26 }
 0x1a2   :  { %v1451_v29 = vpop.f32.mrb[0].mxu1 }
 0x1a3   :  { %v1782_v31 = vadd.f32 %v1451_v29, %v1357_v27  ;;  %v167_v32 = vpop.f32.mrb[1].mxu1 }
 0x1a4   :  { %v1784_v33 = vadd.f32 %v1357_v27, %v167_v32 }
 0x1a5   :  { %v205_v34 = vmul.f32 %v201_v30, %v1782_v31  ;;  %v187_v39 = vmul.f32 %v183_v38, %v1782_v31  ;;  %v177_v47 = vmul.f32 %v1782_v31, %v66_v13 }
 0x1a6   :  { %v204_v36 = vmul.f32 %v199_v28, %v1784_v33  ;;  %v186_v37 = vmul.f32 %v181_v35, %v1784_v33  ;;  %v176_v43 = vmul.f32 %v1784_v33, %v65_v12 }
 0x1a7   :  { %210 = vrot.lane.b32.xlu1 %v205_v34, %s1711_s1 }
 0x1ab   :  { %208 = vrot.lane.b32.xlu1 %v204_v36, %s1711_s1 }
 0x1af   :  { %190 = vrot.lane.b32.xlu1 %v186_v37, %s1711_s1 }
 0x1b3   :  { %192 = vrot.lane.b32.xlu1 %v187_v39, %s1711_s1 }
 0x219   :  { %v211_v40 = vpop.permute.xlu1 %210 }
 0x21a   :  { %v215_v45 = vadd.f32 %v211_v40, %v187_v39 }
 0x21d   :  { %v209_v41 = vpop.permute.xlu1 %208 }
 0x21e   :  { %v214_v42 = vadd.f32 %v209_v41, %v186_v37 }
 0x220   :  { %231 = vrot.lane.b32.xlu1 %v214_v42, %s1713_s7 }
 0x221   :  { %v191_v44 = vpop.permute.xlu1 %190 }
 0x222   :  { %v196_v46 = vadd.f32 %v191_v44, %v176_v43 }
 0x224   :  { %234 = vrot.lane.b32.xlu1 %v215_v45, %s1713_s7  ;;  %217 = vrot.lane.b32.xlu0 %v196_v46, %s1713_s7 }
 0x225   :  { %1454 = vmatprep.mubr.msk.f32.mxu1 %vm250_vm1, %v196_v46  ;;  %v193_v48 = vpop.permute.xlu1 %192 }
 0x226   :  { %v197_v49 = vadd.f32 %v193_v48, %v177_v47 }
 0x228   :  { %248 = vrot.lane.b32.xlu1 %v214_v42, %s1714_s8  ;;  %220 = vrot.lane.b32.xlu0 %v197_v49, %s1713_s7 }
 0x229   :  { %1464 = vmatprep.mubr.msk.f32.mxu0 %vm250_vm1, %v197_v49 }
 0x22c   :  { %415 = vrot.lane.b32.xlu1 %v215_v45, %s1714_s8 }
 0x230   :  { %222 = vrot.lane.b32.xlu1 %v196_v46, %s1715_s9 }
 0x234   :  { %226 = vrot.lane.b32.xlu1 %v197_v49, %s1715_s9 }
 0x292   :  { %v232_v50 = vpop.permute.xlu1 %231 }
 0x296   :  { %v235_v51 = vpop.permute.xlu1 %234  ;;  %v218_v53 = vpop.permute.xlu0 %217 }
 0x297   :  { %498 = vrot.lane.b32.xlu0 %v235_v51, %s1714_s8 }
 0x29a   :  { %v249_v52 = vpop.permute.xlu1 %248  ;;  %v221_v55 = vpop.permute.xlu0 %220 }
 0x29b   :  { %332 = vrot.lane.b32.xlu0 %v232_v50, %s1714_s8  ;;  %1452 = vmatprep.subr.msk.mxu1 %vm250_vm1, %v249_v52 }
 0x29c   :  { %1453 = vmatpush3.xpose.msk.msra.mxu1 %vm250_vm1, %v249_v52 }
 0x29e   :  { %v416_v54 = vpop.permute.xlu1 %415 }
 0x29f   :  { %224 = vrot.lane.b32.xlu0 %v218_v53, %s1715_s9  ;;  %1455 = vmatmul.mubr.msk.f32.vlgmr.msra.gmra.mrb[2].mxu1 %vm250_vm1, %v218_v53 }
 0x2a0   :  { %1462 = vmatprep.subr.msk.mxu0 %vm250_vm1, %v416_v54 }
 0x2a1   :  { %1463 = vmatpush3.xpose.msk.msra.mxu0 %vm250_vm1, %v416_v54 }
 0x2a2   :  { %v223_v56 = vpop.permute.xlu1 %222 }
 0x2a3   :  { %228 = vrot.lane.b32.xlu0 %v221_v55, %s1715_s9  ;;  %1459 = vmatprep.mubr.msk.f32.mxu1 %vm250_vm1, %v223_v56 }
 0x2a4   :  { %1465 = vmatmul.mubr.msk.f32.vlgmr.msra.gmra.mrb[0].mxu0 %vm250_vm1, %v221_v55 }
 0x2a6   :  { %v227_v60 = vpop.permute.xlu1 %226 }
 0x309   :  { %v499_v57 = vpop.permute.xlu0 %498 }
 0x30d   :  { %v333_v58 = vpop.permute.xlu0 %332 }
 0x30e   :  { %1457 = vmatprep.subr.msk.mxu1 %vm250_vm1, %v333_v58 }
 0x30f   :  { %1458 = vmatpush3.xpose.msk.msra.mxu1 %vm250_vm1, %v333_v58 }
 0x310   :  { %1467 = vmatprep.subr.msk.mxu1 %vm250_vm1, %v499_v57 }
 0x311   :  { %v225_v59 = vpop.permute.xlu0 %224 }
 0x312   :  { %1460 = vmatmul.mubr.msk.f32.vlgmr.msra.gmra.mrb[4].mxu1 %vm250_vm1, %v225_v59 }
 0x313   :  { %1468 = vmatpush3.xpose.msk.msra.mxu1 %vm250_vm1, %v499_v57  ;;  %1469 = vmatprep.mubr.msk.f32.mxu1 %vm250_vm1, %v227_v60 }
 0x315   :  { %v229_v61 = vpop.permute.xlu0 %228 }
 0x316   :  { %1470 = vmatmul.mubr.msk.f32.vlgmr.msra.gmra.mrb[6].mxu1 %vm250_vm1, %v229_v61 }
 0x372   :  { %v1456_v5 = vpop.f32.mrb[2].mxu1 }
 0x373   :  { %v329_v6 = vadd.f32 %v1456_v5, %v247_v4  ;;  %v323_v7 = vpop.f32.mrb[3].mxu1 }
 0x374   :  { %v1816_v8 = vadd.f32 %v323_v7, %v247_v4 }
 0x375   :  { %v584_v9 = vsel %vm250_vm1, %v329_v6, -inf }
 0x376   :  { %585 = vmax.xlane.f32.xlu0 %v584_v9  ;;  %v581_v10 = vsel %vm250_vm1, %v1816_v8, -inf }
 0x377   :  { %v1466_v11 = vpop.f32.mrb[0].mxu0  ;;  %582 = vmax.xlane.f32.xlu1 %v581_v10 }
 0x378   :  { %v489_v12 = vpop.f32.mrb[1].mxu0  ;;  %v495_v23 = vadd.f32 %v1466_v11, %v247_v4 }
 0x379   :  { %v490_v18 = vadd.f32 %v489_v12, %v247_v4 }
 0x37a   :  { %v596_v27 = vsel %vm250_vm1, %v495_v23, -inf }
 0x37b   :  { %v593_v25 = vsel %vm250_vm1, %v490_v18, -inf }
 0x3e5   :  { %v1461_v13 = vpop.f32.mrb[4].mxu1 }
 0x3e6   :  { %v1821_v14 = vadd.f32 %v1461_v13, %v247_v4  ;;  %v406_v15 = vpop.f32.mrb[5].mxu1 }
 0x3e7   :  { %v407_v16 = vadd.f32 %v406_v15, %v247_v4 }
 0x3e8   :  { %v590_v17 = vsel %vm250_vm1, %v1821_v14, -inf }
 0x3e9   :  { %591 = vmax.xlane.f32.xlu1 %v590_v17  ;;  %v1471_v19 = vpop.f32.mrb[6].mxu1  ;;  %v587_v20 = vsel %vm250_vm1, %v407_v16, -inf }
 0x3ea   :  { %588 = vmax.xlane.f32.xlu0 %v587_v20  ;;  %v572_v21 = vpop.f32.mrb[7].mxu1  ;;  %v578_v24 = vadd.f32 %v1471_v19, %v247_v4 }
 0x3eb   :  { %v573_v22 = vadd.f32 %v572_v21, %v247_v4 }
 0x3ec   :  { %v602_v28 = vsel %vm250_vm1, %v578_v24, -inf }
 0x3ed   :  { %v599_v26 = vsel %vm250_vm1, %v573_v22, -inf }
 0x3ee   :  { %594 = vmax.xlane.f32.xlu0 %v593_v25  ;;  %600 = vmax.xlane.f32.xlu1 %v599_v26 }
 0x3f2   :  { %597 = vmax.xlane.f32.xlu0 %v596_v27  ;;  %603 = vmax.xlane.f32.xlu1 %v602_v28 }
 0x403   :  { %240 = vrot.lane.b32.xlu1 %v1782_v31, %s1713_s7  ;;  %v586_v29 = vpop.xlane.xlu0 %585 }
 0x404   :  { %v606_v34 = vsub.f32 %v329_v6, %v586_v29  ;;  %v583_v43 = vpop.xlane.xlu1 %582 }
 0x405   :  { %v605_v50 = vsub.f32 %v1816_v8, %v583_v43 }
 0x406   :  { %v615_v37 = vmul.f32 1.442695, %v606_v34 }
 0x407   :  { %v613_v53 = vmul.f32 1.442695, %v605_v50 }
 0x408   :  { %237 = vrot.lane.b32.xlu0 %v1784_v33, %s1713_s7 }
 0x40c   :  { %669 = vrot.lane.b32.xlu0 %v1784_v33, %s1717_s10 }
 0x476   :  { %v592_v45 = vpop.xlane.xlu1 %591 }
 0x477   :  { %v589_v30 = vpop.xlane.xlu0 %588  ;;  %v608_v54 = vsub.f32 %v1821_v14, %v592_v45 }
 0x478   :  { %v607_v41 = vsub.f32 %v407_v16, %v589_v30 }
 0x479   :  { %v619_v58 = vmul.f32 1.442695, %v608_v54 }
 0x47a   :  { %v617_v33 = vmul.f32 1.442695, %v607_v41  ;;  %v50_v41 = vld [vmem:[#allocation6 + $0x40] sm:$0xff] }
 0x47b   :  { %v595_v32 = vpop.xlane.xlu0 %594  ;;  %v601_v49 = vpop.xlane.xlu1 %600 }
 0x47c   :  { %v609_v38 = vsub.f32 %v490_v18, %v595_v32  ;;  %v611_v61 = vsub.f32 %v573_v22, %v601_v49 }
 0x47e   :  { %v621_v42 = vmul.f32 1.442695, %v609_v38  ;;  %v625_v63 = vmul.f32 1.442695, %v611_v61 }
 0x47f   :  { %v598_v35 = vpop.xlane.xlu0 %597  ;;  %v604_v55 = vpop.xlane.xlu1 %603 }
 0x480   :  { %v610_v36 = vsub.f32 %v495_v23, %v598_v35  ;;  %v612_v59 = vsub.f32 %v578_v24, %v604_v55 }
 0x482   :  { %v623_v39 = vmul.f32 1.442695, %v610_v36  ;;  %v627_v62 = vmul.f32 1.442695, %v612_v59 }
 0x483   :  { %v238_v40 = vpop.permute.xlu0 %237  ;;  %v241_v9 = vpop.permute.xlu1 %240 }
 0x484   :  { %1591 = vpow2.f32 %v623_v39  ;;  %753 = vrot.lane.b32.xlu1 %v238_v40, %s1717_s10  ;;  %v49_v40 = vld [vmem:[#allocation6 + $0x38] sm:$0xff] }
 0x485   :  { %1593 = vpow2.f32 %v615_v37  ;;  %v1541_v43 = vpack.c.bf16 %v50_v41, %v49_v40 }
 0x486   :  { %1595 = vpow2.f32 %v621_v42 }
 0x487   :  { %v670_v44 = vpop.permute.xlu0 %669  ;;  %1597 = vpow2.f32 %v617_v33 }
 0x488   :  { %1472 = vmatprep.subr.mxu0 %v670_v44  ;;  %1599 = vpow2.f32 %v613_v53 }
 0x489   :  { %1473 = vmatpush3.msra.mxu0 %v670_v44  ;;  %1601 = vpow2.f32 %v619_v58 }
 0x48a   :  { %1603 = vpow2.f32 %v627_v62 }
 0x48b   :  { %1605 = vpow2.f32 %v625_v63 }
 0x48e   :  { %v1837_v46 = vpop.eup %1591 }
 0x48f   :  { %v644_v47 = vsel %vm250_vm1, %v1837_v46, 0.0  ;;  %v1841_v48 = vpop.eup %1593 }
 0x490   :  { %645 = vadd.xlane.f32.xlu0 %v644_v47  ;;  %v632_v51 = vsel %vm250_vm1, %v1841_v48, 0.0  ;;  %v1846_v52 = vpop.eup %1595  ;;  %v52_v47 = vld [vmem:[#allocation6 + $0x50] sm:$0xff] }
 0x491   :  { %v641_v56 = vsel %vm250_vm1, %v1846_v52, 0.0  ;;  %v1598_v57 = vpop.eup %1597 }
 0x492   :  { %v635_v60 = vsel %vm250_vm1, %v1598_v57, 0.0  ;;  %v1600_v2 = vpop.eup %1599 }
 0x493   :  { %v629_v3 = vsel %vm250_vm1, %v1600_v2, 0.0  ;;  %v1602_v4 = vpop.eup %1601 }
 0x494   :  { %633 = vadd.xlane.f32.xlu0 %v632_v51  ;;  %v638_v5 = vsel %vm250_vm1, %v1602_v4, 0.0  ;;  %v1604_v6 = vpop.eup %1603 }
 0x495   :  { %v650_v7 = vsel %vm250_vm1, %v1604_v6, 0.0  ;;  %v1606_v8 = vpop.eup %1605 }
 0x496   :  { %v647_v10 = vsel %vm250_vm1, %v1606_v8, 0.0 }
 0x498   :  { %642 = vadd.xlane.f32.xlu0 %v641_v56 }
 0x49c   :  { %636 = vadd.xlane.f32.xlu0 %v635_v60 }
 0x4a8   :  { %630 = vadd.xlane.f32.xlu1 %v629_v3 }
 0x4ac   :  { %639 = vadd.xlane.f32.xlu1 %v638_v5 }
 0x4b0   :  { %651 = vadd.xlane.f32.xlu1 %v650_v7  ;;  %v54_v7 = vld [vmem:[#allocation6 + $0x60] sm:$0xff] }
 0x4b2   :  { %921 = vrot.lane.b32.xlu0 %v241_v9, %s1717_s10  ;;  %v56_v9 = vld [vmem:[#allocation6 + $0x70] sm:$0xff] }
 0x4b4   :  { %648 = vadd.xlane.f32.xlu1 %v647_v10 }
 0x4c5   :  { %837 = vrot.lane.b32.xlu1 %v1782_v31, %s1717_s10 }
 0x4f6   :  { %v754_v11 = vpop.permute.xlu1 %753 }
 0x4f7   :  { %1477 = vmatprep.subr.mxu1 %v754_v11 }
 0x4f8   :  { %1478 = vmatpush3.msra.mxu1 %v754_v11 }
 0x51d   :  { %v646_v12 = vpop.xlane.xlu0 %645 }
 0x521   :  { %v634_v13 = vpop.xlane.xlu0 %633 }
 0x525   :  { %v643_v14 = vpop.xlane.xlu0 %642 }
 0x529   :  { %v637_v15 = vpop.xlane.xlu0 %636 }
 0x52a   :  { %1607 = vrcp.f32 %v637_v15 }
 0x52b   :  { %1609 = vrcp.f32 %v634_v13 }
 0x52c   :  { %1611 = vrcp.f32 %v643_v14 }
 0x52d   :  { %v922_v16 = vpop.permute.xlu0 %921 }
 0x52e   :  { %1487 = vmatprep.subr.mxu1 %v922_v16 }
 0x534   :  { %v1608_v17 = vpop.eup %1607 }
 0x535   :  { %v631_v18 = vpop.xlane.xlu1 %630  ;;  %v663_v19 = vmul.f32 %v1608_v17, %v1598_v57  ;;  %v1610_v21 = vpop.eup %1609 }
 0x536   :  { %1613 = vrcp.f32 %v631_v18  ;;  %v1612_v22 = vpop.eup %1611  ;;  %v662_v26 = vmul.f32 %v1610_v21, %v1841_v48  ;;  %v1382_v18 = vld [vmem:[#allocation6 + $0x8] ss:$0 sm:$0xff] }
 0x537   :  { %1479 = vmatprep.mubr.msk.f32.mxu1 %vm250_vm1, %v663_v19  ;;  %1615 = vrcp.f32 %v646_v12  ;;  %v665_v28 = vmul.f32 %v1612_v22, %v1846_v52  ;;  %v57_v22 = vld [vmem:[#allocation6 + $0x78] sm:$0xff] }
 0x539   :  { %v640_v31 = vpop.xlane.xlu1 %639 }
 0x53a   :  { %1617 = vrcp.f32 %v640_v31 }
 0x53d   :  { %v652_v20 = vpop.xlane.xlu1 %651 }
 0x53e   :  { %1619 = vrcp.f32 %v652_v20 }
 0x540   :  { %v1614_v23 = vpop.eup %1613 }
 0x541   :  { %v649_v24 = vpop.xlane.xlu1 %648  ;;  %v661_v25 = vmul.f32 %v1614_v23, %v1600_v2  ;;  %v1616_v27 = vpop.eup %1615  ;;  %v58_v23 = vld [vmem:[#allocation6 + $0x80] sm:$0xff] }
 0x542   :  { %1621 = vrcp.f32 %v649_v24  ;;  %v666_v34 = vmul.f32 %v1616_v27, %v1837_v46  ;;  %v51_v46 = vld [vmem:[#allocation6 + $0x48] sm:$0xff] }
 0x543   :  { %1474 = vmatprep.mubr.msk.f32.mxu0 %vm250_vm1, %v661_v25  ;;  %v1545_v49 = vpack.c.bf16 %v52_v47, %v51_v46  ;;  %v59_v24 = vld [vmem:[#allocation6 + $0x88] sm:$0xff]  ;;  %v1557_v25 = vpack.c.bf16 %v58_v23, %v57_v22 }
 0x544   :  { %v1618_v29 = vpop.eup %1617  ;;  %1475 = vmatmul.mubr.msk.f32.vlgmr.msra.gmra.mrb[2].mxu0 %vm250_vm1, %v662_v26  ;;  %v60_v26 = vld [vmem:[#allocation6 + $0x90] sm:$0xff] }
 0x545   :  { %v664_v30 = vmul.f32 %v1618_v29, %v1602_v4  ;;  %1484 = vmatprep.mubr.msk.f32.mxu0 %vm250_vm1, %v665_v28  ;;  %v838_v32 = vpop.permute.xlu1 %837  ;;  %v1561_v27 = vpack.c.bf16 %v60_v26, %v59_v24  ;;  %v61_v28 = vld [vmem:[#allocation6 + $0x98] sm:$0xff]  ;;  %v62_v29 = vld [vmem:[#allocation6 + $0xa0] sm:$0xff] }
 0x546   :  { %1482 = vmatprep.subr.mxu0 %v838_v32 }
 0x547   :  { %1480 = vmatmul.mubr.msk.f32.vlgmr.msra.gmra.mrb[8].mxu1 %vm250_vm1, %v664_v30  ;;  %1483 = vmatpush3.msra.mxu0 %v838_v32  ;;  %v1565_v30 = vpack.c.bf16 %v62_v29, %v61_v28  ;;  %v63_v32 = vld [vmem:[#allocation6 + $0xa8] sm:$0xff] }
 0x548   :  { %1488 = vmatpush3.msra.mxu1 %v922_v16  ;;  %1485 = vmatmul.mubr.msk.f32.vlgmr.msra.gmra.mrb[4].mxu0 %vm250_vm1, %v666_v34  ;;  %v1620_v35 = vpop.eup %1619  ;;  %v64_v34 = vld [vmem:[#allocation6 + $0xb0] sm:$0xff] }
 0x549   :  { %v668_v38 = vmul.f32 %v1620_v35, %v1604_v6  ;;  %1542 = vmatprep.subr.bf16.mxu0 %v1541_v43  ;;  %v53_v6 = vld [vmem:[#allocation6 + $0x58] sm:$0xff]  ;;  %v1569_v35 = vpack.c.bf16 %v64_v34, %v63_v32 }
 0x54a   :  { %1544 = vmatpush3.bf16.msra.mxu0 %v1541_v43 }
 0x54b   :  { %1546 = vmatprep.subr.bf16.mxu0 %v1545_v49 }
 0x54c   :  { %v1622_v36 = vpop.eup %1621 }
 0x54d   :  { %v667_v37 = vmul.f32 %v1622_v36, %v1606_v8  ;;  %v1549_v8 = vpack.c.bf16 %v54_v7, %v53_v6 }
 0x54e   :  { %1548 = vmatpush3.bf16.msra.mxu0 %v1545_v49 }
 0x54f   :  { %1489 = vmatprep.mubr.msk.f32.mxu1 %vm250_vm1, %v667_v37  ;;  %1550 = vmatprep.subr.bf16.mxu1 %v1549_v8 }
 0x550   :  { %1490 = vmatmul.mubr.msk.f32.vlgmr.msra.gmra.mrb[10].mxu1 %vm250_vm1, %v668_v38  ;;  %1558 = vmatprep.subr.bf16.mxu0 %v1557_v25 }
 0x551   :  { %1552 = vmatpush3.bf16.msra.mxu1 %v1549_v8 }
 0x617   :  { %v1476_v39 = vpop.f32.mrb[2].mxu0 }
 0x618   :  { %1007 = vrot.lane.b32.xlu1 %v1476_v39, %s1709_s20  ;;  %v744_v42 = vpop.f32.mrb[3].mxu0 }
 0x619   :  { %1005 = vst.msk [vmem:[#allocation2] sm:$0xff] %vm250_vm1, %v744_v42 }
 0x61a   :  { %v1481_v44 = vpop.f32.mrb[8].mxu1 }
 0x61b   :  { %1019 = vrot.lane.b32.xlu0 %v1481_v44, %s1718_s11  ;;  %v828_v33 = vpop.f32.mrb[9].mxu1  ;;  %v1486_v45 = vpop.f32.mrb[4].mxu0 }
 0x61c   :  { %1026 = vrot.lane.b32.xlu1 %v1486_v45, %s1709_s20  ;;  %v912_v48 = vpop.f32.mrb[5].mxu0 }
 0x61d   :  { %1024 = vst.msk [vmem:[#allocation2 + $0x8] sm:$0xff] %vm250_vm1, %v912_v48 }
 0x61f   :  { %1013 = vrot.lane.b32.xlu0 %v828_v33, %s1719_s12 }
 0x623   :  { %v1491_v50 = vpop.f32.mrb[10].mxu1 }
 0x624   :  { %1036 = vrot.lane.b32.xlu0 %v1491_v50, %s1718_s11  ;;  %v996_v51 = vpop.f32.mrb[11].mxu1 }
 0x625   :  { %1031 = vrot.lane.b32.xlu1 %v996_v51, %s1719_s12 }
 0x68a   :  { %v1008_v52 = vpop.permute.xlu1 %1007 }
 0x68b   :  { %1011 = vst.msk [vmem:[#allocation2] sm:$0xff] %vm1010_vm3, %v1008_v52 }
 0x68d   :  { %v1020_v53 = vpop.permute.xlu0 %1019 }
 0x68e   :  { %v1027_v54 = vpop.permute.xlu1 %1026 }
 0x68f   :  { %1029 = vst.msk [vmem:[#allocation2 + $0x8] sm:$0xff] %vm1010_vm3, %v1027_v54 }
 0x691   :  { %v1014_v55 = vpop.permute.xlu0 %1013 }
 0x692   :  { %1017 = vst.msk [vmem:[#allocation2] sm:$0xff] %vm1016_vm4, %v1014_v55 }
 0x693   :  { %1023 = vst.msk [vmem:[#allocation2] sm:$0xff] %vm1022_vm5, %v1020_v53 }
 0x696   :  { %v1037_v57 = vpop.permute.xlu0 %1036 }
 0x697   :  { %v1032_v56 = vpop.permute.xlu1 %1031 }
 0x698   :  { %1034 = vst.msk [vmem:[#allocation2 + $0x8] sm:$0xff] %vm1016_vm4, %v1032_v56 }
 0x699   :  { %1039 = vst.msk [vmem:[#allocation2 + $0x8] sm:$0xff] %vm1022_vm5, %v1037_v57 }
 0x69a   :  { %v1040_v58 = vld [vmem:[#allocation2] sm:$0xff] }
 0x69b   :  { %1500 = vmatprep.mubr.msk.f32.mxu0 %vm69_vm0, %v1040_v58 }
 0x6a0   :  { %v1041_v59 = vld [vmem:[#allocation2 + $0x8] sm:$0xff] }
 0x6a1   :  { %1501 = vmatmul.mubr.msk.f32.vlgmr.msra.gmra.mrb[6].mxu0 %vm69_vm0, %v1041_v59 }
 0x6a2   :  { %1560 = vmatpush3.bf16.msra.mxu0 %v1557_v25 }
 0x6a3   :  { %1562 = vmatprep.subr.bf16.mxu0 %v1561_v27 }
 0x6a6   :  { %1564 = vmatpush3.bf16.msra.mxu0 %v1561_v27 }
 0x6a7   :  { %1566 = vmatprep.subr.bf16.mxu0 %v1565_v30 }
 0x6aa   :  { %1568 = vmatpush3.bf16.msra.mxu0 %v1565_v30 }
 0x6ab   :  { %1570 = vmatprep.subr.bf16.mxu0 %v1569_v35 }
 0x6ae   :  { %1572 = vmatpush3.bf16.msra.mxu0 %v1569_v35 }
 0x774   :  { %v1502_v60 = vpop.f32.mrb[6].mxu0 }
 0x775   :  { %v1877_v61 = vadd.f32 %v1502_v60, %v1768_v1  ;;  %v1114_v62 = vpop.f32.mrb[7].mxu0  ;;  %v55_v1 = vld [vmem:[#allocation6 + $0x68] sm:$0xff] }
 0x776   :  { %v1880_v63 = vadd.f32 %v1114_v62, %v1766_v0  ;;  %v1553_v10 = vpack.c.bf16 %v56_v9, %v55_v1 }
 0x777   :  { %v1126_v2 = vmul.f32 %v1877_v61, %v1877_v61 }
 0x778   :  { %v1125_v3 = vmul.f32 %v1880_v63, %v1880_v63  ;;  %1554 = vmatprep.subr.bf16.mxu1 %v1553_v10 }
 0x779   :  { %v1130_v4 = vsel %vm69_vm0, %v1126_v2, 0.0  ;;  %1556 = vmatpush3.bf16.msra.mxu1 %v1553_v10 }
 0x77a   :  { %1131 = vadd.xlane.f32.xlu0 %v1130_v4  ;;  %v1127_v5 = vsel %vm69_vm0, %v1125_v3, 0.0 }
 0x77b   :  { %1128 = vadd.xlane.f32.xlu1 %v1127_v5 }
 0x807   :  { %v1132_v0 = vpop.xlane.xlu0 %1131 }
 0x808   :  { %v1134_v11 = vmul.f32 0.03125, %v1132_v0  ;;  %v1129_v12 = vpop.xlane.xlu1 %1128 }
 0x809   :  { %v1133_v13 = vmul.f32 0.03125, %v1129_v12 }
 0x80a   :  { %v1136_v14 = vadd.f32 1e-06, %v1134_v11 }
 0x80b   :  { %v1135_v15 = vadd.f32 1e-06, %v1133_v13 }
 0x80c   :  { %1623 = vrsqrt.f32 %v1136_v14 }
 0x80d   :  { %1625 = vrsqrt.f32 %v1135_v15 }
 0x816   :  { %v1624_v16 = vpop.eup %1623 }
 0x817   :  { %v1626_v17 = vpop.eup %1625  ;;  %v1140_v19 = vmul.f32 %v1624_v16, %v1877_v61 }
 0x818   :  { %v1139_v31 = vmul.f32 %v1626_v17, %v1880_v63 }
 0x819   :  { %v1146_v21 = vmul.f32 %v1382_v18, %v1140_v19 }
 0x81a   :  { %v1145_v20 = vmul.f32 %v1382_v18, %v1139_v31 }
 0x81c   :  { %1511 = vmatprep.mubr.msk.f32.mxu1 %vm69_vm0, %v1145_v20 }
 0x81d   :  { %1512 = vmatmul.mubr.msk.f32.vlgmr.msra.gmra.mrb[12].mxu1 %vm69_vm0, %v1146_v21 }
 0x8f0   :  { %v1513_v36 = vpop.f32.mrb[12].mxu1 }
 0x8f1   :  { %1246 = vrot.lane.b32.xlu1 %v1513_v36, %s1711_s1  ;;  %v1219_v37 = vpop.f32.mrb[13].mxu1  ;;  %v1386_v39 = vmul.f32 -1.442695, %v1513_v36 }
 0x8f2   :  { %1244 = vrot.lane.b32.xlu0 %v1219_v37, %s1711_s1  ;;  %v1385_v38 = vmul.f32 -1.442695, %v1219_v37 }
 0x8f4   :  { %1627 = vpow2.f32 %v1385_v38 }
 0x8f5   :  { %1629 = vpow2.f32 %v1386_v39 }
 0x8fe   :  { %v1628_v40 = vpop.eup %1627 }
 0x8ff   :  { %v1630_v41 = vpop.eup %1629  ;;  %v1234_v42 = vadd.f32 1.0, %v1628_v40 }
 0x900   :  { %v1235_v43 = vadd.f32 1.0, %v1630_v41 }
 0x901   :  { %1631 = vrcp.f32 %v1234_v42 }
 0x902   :  { %1633 = vrcp.f32 %v1235_v43 }
 0x90b   :  { %v1632_v44 = vpop.eup %1631 }
 0x90c   :  { %v1634_v33 = vpop.eup %1633  ;;  %v1240_v45 = vmul.f32 %v1632_v44, %v1219_v37 }
 0x90d   :  { %v1241_v47 = vmul.f32 %v1634_v33, %v1513_v36 }
 0x963   :  { %v1247_v46 = vpop.permute.xlu1 %1246 }
 0x964   :  { %v1245_v48 = vpop.permute.xlu0 %1244  ;;  %v1251_v50 = vmul.f32 %v1247_v46, %v1241_v47 }
 0x965   :  { %v1250_v49 = vmul.f32 %v1245_v48, %v1240_v45 }
 0x967   :  { %1530 = vmatprep.mubr.msk.f32.mxu0 %vm1252_vm6, %v1250_v49 }
 0x968   :  { %1531 = vmatmul.mubr.msk.f32.vlgmr.msra.gmra.mrb[8].mxu0 %vm1252_vm6, %v1251_v50 }
 0xa3b   :  { %v1532_v51 = vpop.f32.mrb[8].mxu0 }
 0xa3c   :  { %v1335_v52 = vadd.f32 %v1532_v51, %v1877_v61  ;;  %v1325_v53 = vpop.f32.mrb[9].mxu0 }
 0xa3d   :  { %v1334_v54 = vadd.f32 %v1325_v53, %v1880_v63 }
 0xa3e   :  { %1337 = vst.msk [vmem:[#allocation8 + $0x8] sm:$0xff] %vm69_vm0, %v1335_v52 }
 0xa3f   :  { %1336 = vst.msk [vmem:[#allocation8] sm:$0xff] %vm69_vm0, %v1334_v54 }
 0xa40   :  { %1690 = shalt.err (!%p1687_p6)
}
 0xa41   :  { %s1691_s18 = scalar_lea.hbm %s1915_s2, 256 }
 0xa42   :  { %p1692_p7 = scmp.ne.s32.totalorder %s1915_s2, %s1691_s18  ;;  %p1695_p8 = scmp.lt.u32.totalorder %s1691_s18, %s1915_s2 }
 0xa44   :  { %p1697_p9 = pnand %p1695_p8, %p1692_p7 }
 0xa46   :  { %1700 = shalt.err (!%p1697_p9)
}
 0xa47   :  { %1349 = dma.vmem_to_hbm [thread:$0]  %s1344_s14, 256, %s1915_s2, [#allocation5], %s1708_s19, %s1708_s19, %s1709_s20  }
 0xa48   :  { %1705 = dma.done.wait [#allocation5], 256  }
 0xa49   :  { %1706 = vsyncadd [#allocation5], 4294967040 }
 0xa4a   :  { %1353 = vsyncpa [#allocation4], 1 }
 0xa4b   :  { %1354 = vsyncpa [#allocation7], 1 }
 0xa4c   :  { %1355 = vsyncpa [#allocation5], 1 }

</bundles_post_ra>
